<compile_context>
chip_gen: v7x
topology: tpu7x:2x2x1
jax: 0.10.0
libtpu: 0.0.40
codegen_flags: <defaults>
</compile_context>

<pallas_src>
import jax
import jax.numpy as jnp
import numpy as np
from jax.experimental import pallas as pl
from jax.experimental.pallas import tpu as pltpu


def edge_conv_kernel(xi_ref, xj_ref, wa_ref, wb_ref, b_ref, o_ref):
    """One grid step.

    xi_ref : [K*C, TN] bf16   center features  (row k*C + c -> neighbor k, channel c)
    xj_ref : [K*C, TN] bf16   neighbor features
    wa_ref : [Cout, C] bf16   BN-folded weight on x_i
    wb_ref : [Cout, C] bf16   BN-folded weight on x_j
    b_ref  : [Cout, 1] f32    BN-folded bias
    o_ref  : [Cout, TN] f32   lane-dense output (max over K applied)
    """
    c = wa_ref.shape[1]
    k_nbrs = xi_ref.shape[0] // c
    wa = wa_ref[...]
    wb = wb_ref[...]

    def y_of(k):
        # static k -> static sublane slice (free view); f32 accumulation on the MXU
        xi_k = xi_ref[k * c:(k + 1) * c, :]
        xj_k = xj_ref[k * c:(k + 1) * c, :]
        return (jnp.dot(wa, xi_k, preferred_element_type=jnp.float32)
                + jnp.dot(wb, xj_k, preferred_element_type=jnp.float32))

    # K is small & static; the running max is a chain dependency, so live ranges stay bounded.
    m = y_of(0)
    for k in range(1, k_nbrs):
        m = jnp.maximum(m, y_of(k))

    # bias + ReLU hoisted out of the K loop: max_k relu(y_k + b) == relu(max_k y_k + b)
    o_ref[...] = jnp.maximum(m + b_ref[...], 0.0).astype(o_ref.dtype)


def _gather_scrambled(x, idx):
    """Exact replica of the PyTorch batched_index_select (batch=1), including its
    transpose -> contiguous -> view row scramble. Returns [N, K, C]."""
    a, c = x.shape
    n, k = idx.shape
    scrambled = jnp.transpose(x).reshape(a, c)       # == x.transpose(2,1).contiguous().view(A,-1)
    return scrambled[idx.reshape(-1), :].reshape(n, k, c)


def _round_up(v, m):
    return (v + m - 1) // m * m


def _pick_tile_n(n_pad, k, c, cout, cap=16384):
    """Largest lane-aligned vertex tile that fits the per-generation VMEM budget, while
    keeping at least 2 grid steps (v7x megacore) when the vertex axis is large enough."""
    try:
        vmem_cap = pltpu.get_tpu_info().vmem_capacity_bytes   # 64 MiB v7x, 128 MiB v5e/v6e
    except Exception:
        vmem_cap = 64 * 1024 * 1024
    vmem_limit = int(min(vmem_cap // 2, 48 * 1024 * 1024))
    budget = vmem_limit // 2
    # VMEM bytes per lane column: 2 bf16 feature blocks x 2 pipeline buffers,
    # f32 output block x 2 buffers, plus a few f32 [Cout, TN] compute temporaries.
    per_col = 2 * 2 * (k * c * 2) + 2 * (cout * 4) + 4 * (cout * 4)
    fit = max(128, (budget // per_col) // 128 * 128)
    tile = int(min(cap, fit, n_pad))
    if n_pad >= 2 * 128:
        tile = min(tile, _round_up(n_pad // 2, 128))   # >= 2 blocks so both v7x cores get work
    return tile, vmem_limit


def edge_conv2d_pallas(x, edge_index, w_conv, b_conv,
                       bn_gamma, bn_beta, bn_mean, bn_var,
                       eps=1e-5, groups=4):
    n_vert, c = x.shape
    n, k = edge_index.shape[1], edge_index.shape[2]
    cout = w_conv.shape[0]
    c2 = 2 * c
    gin, gout = c2 // groups, cout // groups

    # ---- glue: pad only the tiny int32 index arrays (to a multiple of 128 lanes) ----
    n_pad = _round_up(n, 128)
    idx_j = edge_index[0]
    idx_i = edge_index[1]
    if n_pad != n:
        idx_j = jnp.pad(idx_j, ((0, n_pad - n), (0, 0)))   # padded rows gather vertex 0; sliced off
        idx_i = jnp.pad(idx_i, ((0, n_pad - n), (0, 0)))

    # ---- glue: data-dependent neighbor gather (stays in XLA) ----
    x_i = _gather_scrambled(x, idx_i)                      # [N_pad, K, C]
    x_j = _gather_scrambled(x, idx_j)                      # [N_pad, K, C]

    # [K*C, N_pad]: neighbors*channels on sublanes, vertices on lanes, streamed as bf16
    xi_kcn = jnp.transpose(x_i, (1, 2, 0)).reshape(k * c, n_pad).astype(jnp.bfloat16)
    xj_kcn = jnp.transpose(x_j, (1, 2, 0)).reshape(k * c, n_pad).astype(jnp.bfloat16)

    # ---- glue: fold Conv2d(groups=4) block-diagonal weight + bias + eval-mode BN,
    #            and fold the [x_i ; x_j - x_i] stack into the weights:
    #            y = W_i x_i + W_d (x_j - x_i) + b = (W_i - W_d) x_i + W_d x_j + b ----
    w2d = w_conv[:, :, 0, 0].astype(jnp.float32)           # [Cout, 2C/groups]
    w_full = jnp.zeros((cout, c2), jnp.float32)            # dense block-diagonal equivalent
    for g in range(groups):
        w_full = w_full.at[g * gout:(g + 1) * gout, g * gin:(g + 1) * gin].set(
            w2d[g * gout:(g + 1) * gout, :])
    w_i, w_d = w_full[:, :c], w_full[:, c:]
    bn_scale = (bn_gamma / jnp.sqrt(bn_var + eps)).astype(jnp.float32)
    w_a = (bn_scale[:, None] * (w_i - w_d)).astype(jnp.bfloat16)   # multiplies x_i
    w_b = (bn_scale[:, None] * w_d).astype(jnp.bfloat16)           # multiplies x_j
    b_f = (bn_scale * b_conv + bn_beta - bn_mean * bn_scale
           ).reshape(cout, 1).astype(jnp.float32)

    tile_n, vmem_limit = _pick_tile_n(n_pad, k, c, cout)
    grid = (pl.cdiv(n_pad, tile_n),)                       # ragged last block handled by Pallas

    out = pl.pallas_call(
        edge_conv_kernel,
        out_shape=jax.ShapeDtypeStruct((cout, n_pad), jnp.float32),
        grid_spec=pltpu.PrefetchScalarGridSpec(
            num_scalar_prefetch=0,
            grid=grid,
            in_specs=[
                pl.BlockSpec((k * c, tile_n), lambda i: (0, i)),
                pl.BlockSpec((k * c, tile_n), lambda i: (0, i)),
                pl.BlockSpec((cout, c), lambda i: (0, 0)),
                pl.BlockSpec((cout, c), lambda i: (0, 0)),
                pl.BlockSpec((cout, 1), lambda i: (0, 0)),
            ],
            out_specs=pl.BlockSpec((cout, tile_n), lambda i: (0, i)),
        ),
        compiler_params=pltpu.CompilerParams(
            dimension_semantics=("parallel",),
            vmem_limit_bytes=vmem_limit),
    )(xi_kcn, xj_kcn, w_a, w_b, b_f)

    # back to the PyTorch NCHW result: [1, Cout, N, 1]
    return out[:, :n][None, :, :, None]


def edge_conv2d_reference(x, edge_index, w_conv, b_conv,
                          bn_gamma, bn_beta, bn_mean, bn_var, eps=1e-5):
    """Pure-JAX (f32) replication of the PyTorch forward (eval-mode BN) for checking."""
    def gather_nchw(idx):
        a, c = x.shape
        n, k = idx.shape
        scr = jnp.transpose(x).reshape(a, c)
        return scr[idx.reshape(-1), :].reshape(1, n, k, c).transpose(0, 3, 1, 2)  # [1,C,N,K]

    x_i = gather_nchw(edge_index[1])
    x_j = gather_nchw(edge_index[0])
    feat = jnp.concatenate([x_i, x_j - x_i], axis=1)          # [1, 2C, N, K]
    cout = w_conv.shape[0]
    groups = 4
    c2 = feat.shape[1]
    gin, gout = c2 // groups, cout // groups
    outs = []
    for g in range(groups):
        fg = feat[:, g * gin:(g + 1) * gin]                    # [1, gin, N, K]
        wg = w_conv[g * gout:(g + 1) * gout, :, 0, 0]          # [gout, gin]
        og = jnp.einsum('oc,bcnk->bonk', wg, fg) + b_conv[g * gout:(g + 1) * gout].reshape(1, -1, 1, 1)
        outs.append(og)
    y = jnp.concatenate(outs, axis=1)                          # [1, Cout, N, K]
    y = (y - bn_mean.reshape(1, -1, 1, 1)) / jnp.sqrt(bn_var.reshape(1, -1, 1, 1) + eps)
    y = y * bn_gamma.reshape(1, -1, 1, 1) + bn_beta.reshape(1, -1, 1, 1)
    y = jnp.maximum(y, 0.0)
    return jnp.max(y, axis=-1, keepdims=True)                  # [1, Cout, N, 1]


if __name__ == "__main__":
    key = jax.random.PRNGKey(0)
    k1, k2, k3, k4 = jax.random.split(key, 4)

    # small shapes consistent with the module: x is [num_vertices, in_channels],
    # edge_index is [2, num_vertices, k_neighbors]
    N, C, K, COUT = 16, 4, 8, 8   # 2C=8 and Cout=8 both divisible by groups=4

    x = jax.random.normal(k1, (N, C), jnp.float32)
    edge_index = jax.random.randint(k2, (2, N, K), 0, N)

    # deterministic parameter init (Conv2d(2C, Cout, 1, bias=True, groups=4) + BatchNorm2d)
    w_conv = 0.1 * jax.random.normal(k3, (COUT, (2 * C) // 4, 1, 1), jnp.float32)
    b_conv = 0.1 * jax.random.normal(k4, (COUT,), jnp.float32)
    bn_gamma = 1.0 + 0.1 * jnp.arange(COUT, dtype=jnp.float32)
    bn_beta = 0.05 * jnp.arange(COUT, dtype=jnp.float32)
    bn_mean = 0.02 * jnp.arange(COUT, dtype=jnp.float32)
    bn_var = 1.0 + 0.03 * jnp.arange(COUT, dtype=jnp.float32)

    out = edge_conv2d_pallas(x, edge_index, w_conv, b_conv,
                             bn_gamma, bn_beta, bn_mean, bn_var)
    out = jax.block_until_ready(out)

    ref = edge_conv2d_reference(x, edge_index, w_conv, b_conv,
                                bn_gamma, bn_beta, bn_mean, bn_var)
    assert out.shape == (1, COUT, N, 1), out.shape
    # tolerance accommodates bf16 feature/weight streaming (f32 accumulation) vs f32 reference
    np.testing.assert_allclose(np.asarray(out), np.asarray(ref), rtol=5e-2, atol=5e-2)
    print("KERNEL_OK")
</pallas_src>

<mosaic_0001>
module attributes {stable_mosaic.version = 11 : i64} {
  func.func @edge_conv_kernel(%arg0: i32, %arg1: memref<32x128xbf16, #tpu.memory_space<vmem>>, %arg2: memref<32x128xbf16, #tpu.memory_space<vmem>>, %arg3: memref<8x4xbf16, #tpu.memory_space<vmem>>, %arg4: memref<8x4xbf16, #tpu.memory_space<vmem>>, %arg5: memref<8x1xf32, #tpu.memory_space<vmem>>, %arg6: memref<8x128xf32, #tpu.memory_space<vmem>>) attributes {dimension_semantics = [#tpu.dimension_semantics<parallel>], iteration_bounds = array<i64: 1>, scalar_prefetch = 0 : i64, scratch_operands = 0 : i64, tpu.core_type = #tpu.core_type<tc>, window_params = [{transform_indices = @transform_0, window_bounds = array<i64: 32, 128>}, {transform_indices = @transform_1, window_bounds = array<i64: 32, 128>}, {pipeline_mode = #tpu.pipeline_mode<synchronous>, transform_indices = @transform_2, window_bounds = array<i64: 8, 4>}, {pipeline_mode = #tpu.pipeline_mode<synchronous>, transform_indices = @transform_3, window_bounds = array<i64: 8, 4>}, {pipeline_mode = #tpu.pipeline_mode<synchronous>, transform_indices = @transform_4, window_bounds = array<i64: 8, 1>}, {transform_indices = @transform_5, window_bounds = array<i64: 8, 128>}]} {
    %c0 = arith.constant 0 : index
    %c0_0 = arith.constant 0 : index
    %0 = vector.load %arg3[%c0, %c0_0] : memref<8x4xbf16, #tpu.memory_space<vmem>>, vector<8x4xbf16>
    %c0_1 = arith.constant 0 : index
    %c0_2 = arith.constant 0 : index
    %1 = vector.load %arg4[%c0_1, %c0_2] : memref<8x4xbf16, #tpu.memory_space<vmem>>, vector<8x4xbf16>
    %c0_3 = arith.constant 0 : index
    %c0_4 = arith.constant 0 : index
    %2 = vector.load %arg1[%c0_3, %c0_4] : memref<32x128xbf16, #tpu.memory_space<vmem>>, vector<4x128xbf16>
    %c0_5 = arith.constant 0 : index
    %c0_6 = arith.constant 0 : index
    %3 = vector.load %arg2[%c0_5, %c0_6] : memref<32x128xbf16, #tpu.memory_space<vmem>>, vector<4x128xbf16>
    %cst = arith.constant dense<0.000000e+00> : vector<8x128xf32>
    %4 = tpu.matmul %0, %2, %cst {dimension_numbers = #tpu.dot_dimension_numbers<[1], [0], [0], [1], [0, 0, 1, 1], [], []>} : vector<8x4xbf16>, vector<4x128xbf16>, vector<8x128xf32> -> vector<8x128xf32>
    %cst_7 = arith.constant dense<0.000000e+00> : vector<8x128xf32>
    %5 = tpu.matmul %1, %3, %cst_7 {dimension_numbers = #tpu.dot_dimension_numbers<[1], [0], [0], [1], [0, 0, 1, 1], [], []>} : vector<8x4xbf16>, vector<4x128xbf16>, vector<8x128xf32> -> vector<8x128xf32>
    %6 = arith.addf %4, %5 : vector<8x128xf32>
    %c4 = arith.constant 4 : index
    %c0_8 = arith.constant 0 : index
    %7 = vector.load %arg1[%c4, %c0_8] : memref<32x128xbf16, #tpu.memory_space<vmem>>, vector<4x128xbf16>
    %c4_9 = arith.constant 4 : index
    %c0_10 = arith.constant 0 : index
    %8 = vector.load %arg2[%c4_9, %c0_10] : memref<32x128xbf16, #tpu.memory_space<vmem>>, vector<4x128xbf16>
    %cst_11 = arith.constant dense<0.000000e+00> : vector<8x128xf32>
    %9 = tpu.matmul %0, %7, %cst_11 {dimension_numbers = #tpu.dot_dimension_numbers<[1], [0], [0], [1], [0, 0, 1, 1], [], []>} : vector<8x4xbf16>, vector<4x128xbf16>, vector<8x128xf32> -> vector<8x128xf32>
    %cst_12 = arith.constant dense<0.000000e+00> : vector<8x128xf32>
    %10 = tpu.matmul %1, %8, %cst_12 {dimension_numbers = #tpu.dot_dimension_numbers<[1], [0], [0], [1], [0, 0, 1, 1], [], []>} : vector<8x4xbf16>, vector<4x128xbf16>, vector<8x128xf32> -> vector<8x128xf32>
    %11 = arith.addf %9, %10 : vector<8x128xf32>
    %12 = arith.maximumf %6, %11 : vector<8x128xf32>
    %c8 = arith.constant 8 : index
    %c0_13 = arith.constant 0 : index
    %13 = vector.load %arg1[%c8, %c0_13] : memref<32x128xbf16, #tpu.memory_space<vmem>>, vector<4x128xbf16>
    %c8_14 = arith.constant 8 : index
    %c0_15 = arith.constant 0 : index
    %14 = vector.load %arg2[%c8_14, %c0_15] : memref<32x128xbf16, #tpu.memory_space<vmem>>, vector<4x128xbf16>
    %cst_16 = arith.constant dense<0.000000e+00> : vector<8x128xf32>
    %15 = tpu.matmul %0, %13, %cst_16 {dimension_numbers = #tpu.dot_dimension_numbers<[1], [0], [0], [1], [0, 0, 1, 1], [], []>} : vector<8x4xbf16>, vector<4x128xbf16>, vector<8x128xf32> -> vector<8x128xf32>
    %cst_17 = arith.constant dense<0.000000e+00> : vector<8x128xf32>
    %16 = tpu.matmul %1, %14, %cst_17 {dimension_numbers = #tpu.dot_dimension_numbers<[1], [0], [0], [1], [0, 0, 1, 1], [], []>} : vector<8x4xbf16>, vector<4x128xbf16>, vector<8x128xf32> -> vector<8x128xf32>
    %17 = arith.addf %15, %16 : vector<8x128xf32>
    %18 = arith.maximumf %12, %17 : vector<8x128xf32>
    %c12 = arith.constant 12 : index
    %c0_18 = arith.constant 0 : index
    %19 = vector.load %arg1[%c12, %c0_18] : memref<32x128xbf16, #tpu.memory_space<vmem>>, vector<4x128xbf16>
    %c12_19 = arith.constant 12 : index
    %c0_20 = arith.constant 0 : index
    %20 = vector.load %arg2[%c12_19, %c0_20] : memref<32x128xbf16, #tpu.memory_space<vmem>>, vector<4x128xbf16>
    %cst_21 = arith.constant dense<0.000000e+00> : vector<8x128xf32>
    %21 = tpu.matmul %0, %19, %cst_21 {dimension_numbers = #tpu.dot_dimension_numbers<[1], [0], [0], [1], [0, 0, 1, 1], [], []>} : vector<8x4xbf16>, vector<4x128xbf16>, vector<8x128xf32> -> vector<8x128xf32>
    %cst_22 = arith.constant dense<0.000000e+00> : vector<8x128xf32>
    %22 = tpu.matmul %1, %20, %cst_22 {dimension_numbers = #tpu.dot_dimension_numbers<[1], [0], [0], [1], [0, 0, 1, 1], [], []>} : vector<8x4xbf16>, vector<4x128xbf16>, vector<8x128xf32> -> vector<8x128xf32>
    %23 = arith.addf %21, %22 : vector<8x128xf32>
    %24 = arith.maximumf %18, %23 : vector<8x128xf32>
    %c16 = arith.constant 16 : index
    %c0_23 = arith.constant 0 : index
    %25 = vector.load %arg1[%c16, %c0_23] : memref<32x128xbf16, #tpu.memory_space<vmem>>, vector<4x128xbf16>
    %c16_24 = arith.constant 16 : index
    %c0_25 = arith.constant 0 : index
    %26 = vector.load %arg2[%c16_24, %c0_25] : memref<32x128xbf16, #tpu.memory_space<vmem>>, vector<4x128xbf16>
    %cst_26 = arith.constant dense<0.000000e+00> : vector<8x128xf32>
    %27 = tpu.matmul %0, %25, %cst_26 {dimension_numbers = #tpu.dot_dimension_numbers<[1], [0], [0], [1], [0, 0, 1, 1], [], []>} : vector<8x4xbf16>, vector<4x128xbf16>, vector<8x128xf32> -> vector<8x128xf32>
    %cst_27 = arith.constant dense<0.000000e+00> : vector<8x128xf32>
    %28 = tpu.matmul %1, %26, %cst_27 {dimension_numbers = #tpu.dot_dimension_numbers<[1], [0], [0], [1], [0, 0, 1, 1], [], []>} : vector<8x4xbf16>, vector<4x128xbf16>, vector<8x128xf32> -> vector<8x128xf32>
    %29 = arith.addf %27, %28 : vector<8x128xf32>
    %30 = arith.maximumf %24, %29 : vector<8x128xf32>
    %c20 = arith.constant 20 : index
    %c0_28 = arith.constant 0 : index
    %31 = vector.load %arg1[%c20, %c0_28] : memref<32x128xbf16, #tpu.memory_space<vmem>>, vector<4x128xbf16>
    %c20_29 = arith.constant 20 : index
    %c0_30 = arith.constant 0 : index
    %32 = vector.load %arg2[%c20_29, %c0_30] : memref<32x128xbf16, #tpu.memory_space<vmem>>, vector<4x128xbf16>
    %cst_31 = arith.constant dense<0.000000e+00> : vector<8x128xf32>
    %33 = tpu.matmul %0, %31, %cst_31 {dimension_numbers = #tpu.dot_dimension_numbers<[1], [0], [0], [1], [0, 0, 1, 1], [], []>} : vector<8x4xbf16>, vector<4x128xbf16>, vector<8x128xf32> -> vector<8x128xf32>
    %cst_32 = arith.constant dense<0.000000e+00> : vector<8x128xf32>
    %34 = tpu.matmul %1, %32, %cst_32 {dimension_numbers = #tpu.dot_dimension_numbers<[1], [0], [0], [1], [0, 0, 1, 1], [], []>} : vector<8x4xbf16>, vector<4x128xbf16>, vector<8x128xf32> -> vector<8x128xf32>
    %35 = arith.addf %33, %34 : vector<8x128xf32>
    %36 = arith.maximumf %30, %35 : vector<8x128xf32>
    %c24 = arith.constant 24 : index
    %c0_33 = arith.constant 0 : index
    %37 = vector.load %arg1[%c24, %c0_33] : memref<32x128xbf16, #tpu.memory_space<vmem>>, vector<4x128xbf16>
    %c24_34 = arith.constant 24 : index
    %c0_35 = arith.constant 0 : index
    %38 = vector.load %arg2[%c24_34, %c0_35] : memref<32x128xbf16, #tpu.memory_space<vmem>>, vector<4x128xbf16>
    %cst_36 = arith.constant dense<0.000000e+00> : vector<8x128xf32>
    %39 = tpu.matmul %0, %37, %cst_36 {dimension_numbers = #tpu.dot_dimension_numbers<[1], [0], [0], [1], [0, 0, 1, 1], [], []>} : vector<8x4xbf16>, vector<4x128xbf16>, vector<8x128xf32> -> vector<8x128xf32>
    %cst_37 = arith.constant dense<0.000000e+00> : vector<8x128xf32>
    %40 = tpu.matmul %1, %38, %cst_37 {dimension_numbers = #tpu.dot_dimension_numbers<[1], [0], [0], [1], [0, 0, 1, 1], [], []>} : vector<8x4xbf16>, vector<4x128xbf16>, vector<8x128xf32> -> vector<8x128xf32>
    %41 = arith.addf %39, %40 : vector<8x128xf32>
    %42 = arith.maximumf %36, %41 : vector<8x128xf32>
    %c28 = arith.constant 28 : index
    %c0_38 = arith.constant 0 : index
    %43 = vector.load %arg1[%c28, %c0_38] : memref<32x128xbf16, #tpu.memory_space<vmem>>, vector<4x128xbf16>
    %c28_39 = arith.constant 28 : index
    %c0_40 = arith.constant 0 : index
    %44 = vector.load %arg2[%c28_39, %c0_40] : memref<32x128xbf16, #tpu.memory_space<vmem>>, vector<4x128xbf16>
    %cst_41 = arith.constant dense<0.000000e+00> : vector<8x128xf32>
    %45 = tpu.matmul %0, %43, %cst_41 {dimension_numbers = #tpu.dot_dimension_numbers<[1], [0], [0], [1], [0, 0, 1, 1], [], []>} : vector<8x4xbf16>, vector<4x128xbf16>, vector<8x128xf32> -> vector<8x128xf32>
    %cst_42 = arith.constant dense<0.000000e+00> : vector<8x128xf32>
    %46 = tpu.matmul %1, %44, %cst_42 {dimension_numbers = #tpu.dot_dimension_numbers<[1], [0], [0], [1], [0, 0, 1, 1], [], []>} : vector<8x4xbf16>, vector<4x128xbf16>, vector<8x128xf32> -> vector<8x128xf32>
    %47 = arith.addf %45, %46 : vector<8x128xf32>
    %48 = arith.maximumf %42, %47 : vector<8x128xf32>
    %c0_43 = arith.constant 0 : index
    %c0_44 = arith.constant 0 : index
    %49 = vector.load %arg5[%c0_43, %c0_44] : memref<8x1xf32, #tpu.memory_space<vmem>>, vector<8x1xf32>
    %50 = vector.broadcast %49 : vector<8x1xf32> to vector<8x128xf32>
    %51 = arith.addf %48, %50 : vector<8x128xf32>
    %cst_45 = arith.constant 0.000000e+00 : f32
    %52 = vector.broadcast %cst_45 : f32 to vector<8x128xf32>
    %53 = arith.maximumf %51, %52 : vector<8x128xf32>
    %c0_46 = arith.constant 0 : index
    %c0_47 = arith.constant 0 : index
    %54 = vector.load %arg6[%c0_46, %c0_47] : memref<8x128xf32, #tpu.memory_space<vmem>>, vector<8x128xf32>
    tpu.vector_store %arg6[%c0_46, %c0_47], %53 {strides = array<i32>} : memref<8x128xf32, #tpu.memory_space<vmem>>, vector<8x128xf32>,
    return
  }
  func.func @transform_0(%arg0: i32) -> (i32, i32) {
    %c0_i32 = arith.constant 0 : i32
    %c0_i32_0 = arith.constant 0 : i32
    return %c0_i32, %arg0 : i32, i32
  }
  func.func @transform_1(%arg0: i32) -> (i32, i32) {
    %c0_i32 = arith.constant 0 : i32
    %c0_i32_0 = arith.constant 0 : i32
    return %c0_i32, %arg0 : i32, i32
  }
  func.func @transform_2(%arg0: i32) -> (i32, i32) {
    %c0_i32 = arith.constant 0 : i32
    %c0_i32_0 = arith.constant 0 : i32
    %c0_i32_1 = arith.constant 0 : i32
    return %c0_i32, %c0_i32_0 : i32, i32
  }
  func.func @transform_3(%arg0: i32) -> (i32, i32) {
    %c0_i32 = arith.constant 0 : i32
    %c0_i32_0 = arith.constant 0 : i32
    %c0_i32_1 = arith.constant 0 : i32
    return %c0_i32, %c0_i32_0 : i32, i32
  }
  func.func @transform_4(%arg0: i32) -> (i32, i32) {
    %c0_i32 = arith.constant 0 : i32
    %c0_i32_0 = arith.constant 0 : i32
    %c0_i32_1 = arith.constant 0 : i32
    return %c0_i32, %c0_i32_0 : i32, i32
  }
  func.func @transform_5(%arg0: i32) -> (i32, i32) {
    %c0_i32 = arith.constant 0 : i32
    %c0_i32_0 = arith.constant 0 : i32
    return %c0_i32, %arg0 : i32, i32
  }
}

</mosaic_0001>

<bundles_post_ra>
// kernel: tpu_custom_call.1
= control target key start
LH: loop header
LB: loop body
LE: loop exit
PB: predicated region body
PF: predicated region fallthrough
CT: control target
= control target key end

     0   :  { %10 = vsyncpa [#allocation3], 0  ;;  %s1255_s0 = inlined_call_operand.vmem [shape: bf16[32,128], index: 0, kind: input, shape index: {}]   ;;  %s1256_s1 = inlined_call_operand.hbm [shape: bf16[32,128], index: 1, kind: input, shape index: {}]   ;;  %s1257_s2 = inlined_call_operand.vmem [shape: bf16[8,4], index: 2, kind: input, shape index: {}]   ;;  %s1258_s3 = inlined_call_operand.vmem [shape: bf16[8,4], index: 3, kind: input, shape index: {}]   ;;  %s1259_s4 = inlined_call_operand.vmem [shape: f32[8,1], index: 4, kind: input, shape index: {}]   ;;  %s1260_s5 = inlined_call_operand.hbm [shape: f32[8,128], index: 5, kind: output, shape index: {}]  }
   0x1   :  { %11 = vsyncpa [#allocation4], 0  ;;  %s1061_s18 = smov [#allocation2]   ;;  %s1013_s22 = scalar_lea.hbm %s1256_s1, 256 }
   0x2   :  { %s19_s19 = sshll.u32 %s1061_s18, 4  ;;  %p1014_p0 = scmp.ne.s32.totalorder %s1256_s1, %s1013_s22  ;;  %s20_s19 = int_to_ptr.vmem [resolvable:$true] %s19_s19 }
   0x3   :  { %p1017_p1 = scmp.lt.u32.totalorder %s1013_s22, %s1256_s1 }
   0x5   :  { %p1019_p2 = pnand %p1017_p1, %p1014_p0 }
   0x7   :  { %1022 = shalt.err (!%p1019_p2)
}
   0x8   :  { %s1023_s27 = scalar_lea.vmem %s20_s19, 256  ;;  %p1028_p4 = scmp.lt.s32.totalorder %s20_s19, %s20_s19 }
   0x9   :  { %p1024_p3 = scmp.ne.s32.totalorder %s20_s19, %s1023_s27  ;;  %p1029_p5 = scmp.lt.s32.totalorder %s1023_s27, %s1023_s27 }
   0xb   :  { %p1030_p6 = por %p1029_p5, %p1028_p4 }
   0xd   :  { %p1031_p7 = pnand %p1030_p6, %p1024_p3 }
   0xf   :  { %1034 = shalt.err (!%p1031_p7)
}
  0x10   :  { %s1062_s28 = smov 64   ;;  %s1063_s29 = smov 4  }
  0x11   :  { %25 = dma.hbm_to_vmem [thread:$0]  %s1256_s1, 256, %s20_s19, [#allocation3], %s1062_s28, %s1062_s28, %s1063_s29  }
  0x12   :  { %1057 = dma.done.wait [#allocation3], 256  }
  0x13   :  { %1058 = vsyncadd [#allocation3], 4294967040  ;;  %v1064_v0 = vmov 0.0   ;;  %vm1065_vm0 = vmmov 0   ;;  %v1066_v1 = vmov 0   ;;  %vm44_vm1 = vcmask 1041408  }
  0x14   :  { %869 = vmatprep.subr.bf16.mxu0 %v1064_v0  ;;  %871 = vmatprep.mubr.msk.bf16.mxu0 %vm1065_vm0, %v1064_v0  ;;  %v39_v2 = vld [vmem:[#allocation2] sm:$0x3]  ;;  %vm40_vm2 = vcmask 31744   ;;  %v1007_v14 = vld [vmem:[#allocation2 + $0x4] ss:$0 sps:$4 sm:$0xcc]  }
  0x15   :  { %881 = vmatprep.subr.bf16.mxu1 %v1064_v0  ;;  %883 = vmatprep.mubr.msk.bf16.mxu1 %vm1065_vm0, %v1064_v0  ;;  %v1119_v3 = vld [vmem:[%s1258_s3] sm:$0xf]  ;;  %v46_v4 = vsel %vm44_vm1, %v39_v2, 0  ;;  %v232_v15 = vld [vmem:[#allocation2 + $0x4] sm:$0x3]  ;;  %v325_v18 = vrot.slane %v1007_v14, 2 }
  0x16   :  { %1004 = vset.pattern.permute.xlu0 %v1066_v1  ;;  %v1005_v5 = vld [vmem:[#allocation2] ss:$0 sps:$4 sm:$0xcc]   ;;  %870 = vmatpush3.bf16.msra.mxu0 %v46_v4  ;;  %v234_v17 = vsel %vm44_vm1, %v232_v15, 0  ;;  %v231_v21 = vld [vmem:[%s1255_s0 + $0x4] sm:$0x3] }
  0x17   :  { %v38_v6 = vld [vmem:[%s1255_s0] sm:$0x3]  ;;  %v139_v8 = vrot.slane %v1005_v5, 2  ;;  %875 = vmatprep.subr.bf16.mxu0 %v1064_v0  ;;  %v327_v19 = vsel %vm44_vm1, %v325_v18, 0  ;;  %v277_v22 = vsel %vm44_vm1, %v231_v21, 0 }
  0x18   :  { %v1006_v7 = vld [vmem:[%s1255_s0] ss:$0 sps:$4 sm:$0xcc]   ;;  %v92_v9 = vsel %vm44_vm1, %v38_v6, 0  ;;  %v418_v26 = vld [vmem:[#allocation2 + $0x8] sm:$0x3] }
  0x19   :  { %v789_v10 = vld [vmem:[%s1259_s4] sm:$0xff]  ;;  %v186_v11 = vrot.slane %v1006_v7, 2  ;;  %872 = vmatmul.mubr.msk.bf16.vlgmr.msra.gmra.mrb[0].mxu0 %vm40_vm2, %v1119_v3  ;;  %v141_v12 = vsel %vm44_vm1, %v139_v8, 0  ;;  %v1009_v25 = vld [vmem:[#allocation2 + $0x8] ss:$0 sps:$4 sm:$0xcc]  }
  0x1a   :  { %792 = vperm.xlu0 %1004, %v789_v10   ;;  %882 = vmatpush3.bf16.msra.mxu1 %v141_v12  ;;  %v1149_v16 = vld [vmem:[%s1257_s2] sm:$0xf]  ;;  %v1008_v20 = vld [vmem:[%s1255_s0 + $0x4] ss:$0 sps:$4 sm:$0xcc]   ;;  %v420_v27 = vsel %vm44_vm1, %v418_v26, 0 }
  0x1b   :  { %876 = vmatpush3.bf16.msra.mxu0 %v92_v9  ;;  %887 = vmatprep.subr.bf16.mxu1 %v1064_v0  ;;  %v188_v13 = vsel %vm44_vm1, %v186_v11, 0  ;;  %v372_v23 = vrot.slane %v1008_v20, 2  ;;  %v511_v28 = vrot.slane %v1009_v25, 2  ;;  %v1010_v30 = vld [vmem:[%s1255_s0 + $0x8] ss:$0 sps:$4 sm:$0xcc]  }
  0x1c   :  { %877 = vmatprep.mubr.msk.bf16.mxu0 %vm1065_vm0, %v1064_v0  ;;  %893 = vmatprep.subr.bf16.mxu0 %v1064_v0  ;;  %v417_v31 = vld [vmem:[%s1255_s0 + $0x8] sm:$0x3]  ;;  %v558_v33 = vrot.slane %v1010_v30, 2  ;;  %v1011_v35 = vld [vmem:[#allocation2 + $0xc] ss:$0 sps:$4 sm:$0xcc]  }
  0x1d   :  { %884 = vmatmul.mubr.msk.bf16.vlgmr.msra.gmra.mrb[0].mxu1 %vm40_vm2, %v1119_v3  ;;  %v374_v24 = vsel %vm44_vm1, %v372_v23, 0  ;;  %v513_v29 = vsel %vm44_vm1, %v511_v28, 0  ;;  %v463_v32 = vsel %vm44_vm1, %v417_v31, 0  ;;  %v604_v36 = vld [vmem:[#allocation2 + $0xc] sm:$0x3]  ;;  %v697_v38 = vrot.slane %v1011_v35, 2 }
  0x1e   :  { %888 = vmatpush3.bf16.msra.mxu1 %v188_v13  ;;  %889 = vmatprep.mubr.msk.bf16.mxu1 %vm1065_vm0, %v1064_v0  ;;  %v560_v34 = vsel %vm44_vm1, %v558_v33, 0  ;;  %v606_v37 = vsel %vm44_vm1, %v604_v36, 0  ;;  %v1012_v40 = vld [vmem:[%s1255_s0 + $0xc] ss:$0 sps:$4 sm:$0xcc]  }
  0x1f   :  { %905 = vmatprep.subr.bf16.mxu1 %v1064_v0  ;;  %v699_v39 = vsel %vm44_vm1, %v697_v38, 0  ;;  %v603_v41 = vld [vmem:[%s1255_s0 + $0xc] sm:$0x3]  ;;  %v744_v43 = vrot.slane %v1012_v40, 2  ;;  %s1067_s0 = smov [#allocation5]  }
  0x20   :  { %v649_v42 = vsel %vm44_vm1, %v603_v41, 0  ;;  %s804_s25 = sshll.u32 %s1067_s0, 4  ;;  %s805_s25 = int_to_ptr.vmem [resolvable:$true] %s804_s25 }
  0x21   :  { %v746_v44 = vsel %vm44_vm1, %v744_v43, 0  ;;  %s1035_s26 = scalar_lea.vmem %s805_s25, 128  ;;  %p1040_p9 = scmp.lt.s32.totalorder %s805_s25, %s805_s25 }
  0x22   :  { %p1036_p8 = scmp.ne.s32.totalorder %s805_s25, %s1035_s26  ;;  %p1041_p10 = scmp.lt.s32.totalorder %s1035_s26, %s1035_s26 }
  0x24   :  { %p1042_p11 = por %p1041_p10, %p1040_p9 }
  0x25   :  { %878 = vmatmul.mubr.msk.bf16.vlgmr.msra.gmra.mrb[0].mxu0 %vm40_vm2, %v1149_v16 }
  0x26   :  { %894 = vmatpush3.bf16.msra.mxu0 %v234_v17  ;;  %895 = vmatprep.mubr.msk.bf16.mxu0 %vm1065_vm0, %v1064_v0  ;;  %p1043_p12 = pnand %p1042_p11, %p1036_p8 }
  0x27   :  { %899 = vmatprep.subr.bf16.mxu0 %v1064_v0 }
  0x29   :  { %890 = vmatmul.mubr.msk.bf16.vlgmr.msra.gmra.mrb[0].mxu1 %vm40_vm2, %v1149_v16 }
  0x2a   :  { %906 = vmatpush3.bf16.msra.mxu1 %v327_v19  ;;  %907 = vmatprep.mubr.msk.bf16.mxu1 %vm1065_vm0, %v1064_v0 }
  0x2b   :  { %911 = vmatprep.subr.bf16.mxu1 %v1064_v0 }
  0x2d   :  { %896 = vmatmul.mubr.msk.bf16.vlgmr.msra.gmra.mrb[4].mxu0 %vm40_vm2, %v1119_v3 }
  0x2e   :  { %900 = vmatpush3.bf16.msra.mxu0 %v277_v22  ;;  %901 = vmatprep.mubr.msk.bf16.mxu0 %vm1065_vm0, %v1064_v0 }
  0x2f   :  { %917 = vmatprep.subr.bf16.mxu0 %v1064_v0 }
  0x31   :  { %908 = vmatmul.mubr.msk.bf16.vlgmr.msra.gmra.mrb[4].mxu1 %vm40_vm2, %v1119_v3 }
  0x32   :  { %912 = vmatpush3.bf16.msra.mxu1 %v374_v24  ;;  %913 = vmatprep.mubr.msk.bf16.mxu1 %vm1065_vm0, %v1064_v0 }
  0x33   :  { %929 = vmatprep.subr.bf16.mxu1 %v1064_v0 }
  0x39   :  { %902 = vmatmul.mubr.msk.bf16.vlgmr.msra.gmra.mrb[4].mxu0 %vm40_vm2, %v1149_v16 }
  0x3a   :  { %918 = vmatpush3.bf16.msra.mxu0 %v420_v27  ;;  %919 = vmatprep.mubr.msk.bf16.mxu0 %vm1065_vm0, %v1064_v0 }
  0x3b   :  { %923 = vmatprep.subr.bf16.mxu0 %v1064_v0 }
  0x3d   :  { %914 = vmatmul.mubr.msk.bf16.vlgmr.msra.gmra.mrb[4].mxu1 %vm40_vm2, %v1149_v16 }
  0x3e   :  { %930 = vmatpush3.bf16.msra.mxu1 %v513_v29  ;;  %931 = vmatprep.mubr.msk.bf16.mxu1 %vm1065_vm0, %v1064_v0 }
  0x3f   :  { %935 = vmatprep.subr.bf16.mxu1 %v1064_v0 }
  0x41   :  { %920 = vmatmul.mubr.msk.bf16.vlgmr.msra.gmra.mrb[8].mxu0 %vm40_vm2, %v1119_v3 }
  0x42   :  { %924 = vmatpush3.bf16.msra.mxu0 %v463_v32  ;;  %925 = vmatprep.mubr.msk.bf16.mxu0 %vm1065_vm0, %v1064_v0 }
  0x43   :  { %941 = vmatprep.subr.bf16.mxu0 %v1064_v0 }
  0x45   :  { %932 = vmatmul.mubr.msk.bf16.vlgmr.msra.gmra.mrb[8].mxu1 %vm40_vm2, %v1119_v3 }
  0x46   :  { %936 = vmatpush3.bf16.msra.mxu1 %v560_v34  ;;  %937 = vmatprep.mubr.msk.bf16.mxu1 %vm1065_vm0, %v1064_v0 }
  0x47   :  { %953 = vmatprep.subr.bf16.mxu1 %v1064_v0 }
  0x4d   :  { %926 = vmatmul.mubr.msk.bf16.vlgmr.msra.gmra.mrb[8].mxu0 %vm40_vm2, %v1149_v16 }
  0x4e   :  { %942 = vmatpush3.bf16.msra.mxu0 %v606_v37  ;;  %943 = vmatprep.mubr.msk.bf16.mxu0 %vm1065_vm0, %v1064_v0 }
  0x4f   :  { %947 = vmatprep.subr.bf16.mxu0 %v1064_v0 }
  0x51   :  { %938 = vmatmul.mubr.msk.bf16.vlgmr.msra.gmra.mrb[8].mxu1 %vm40_vm2, %v1149_v16 }
  0x52   :  { %954 = vmatpush3.bf16.msra.mxu1 %v699_v39  ;;  %955 = vmatprep.mubr.msk.bf16.mxu1 %vm1065_vm0, %v1064_v0 }
  0x53   :  { %959 = vmatprep.subr.bf16.mxu1 %v1064_v0 }
  0x55   :  { %944 = vmatmul.mubr.msk.bf16.vlgmr.msra.gmra.mrb[12].mxu0 %vm40_vm2, %v1119_v3 }
  0x56   :  { %948 = vmatpush3.bf16.msra.mxu0 %v649_v42  ;;  %949 = vmatprep.mubr.msk.bf16.mxu0 %vm1065_vm0, %v1064_v0 }
  0x59   :  { %956 = vmatmul.mubr.msk.bf16.vlgmr.msra.gmra.mrb[12].mxu1 %vm40_vm2, %v1119_v3 }
  0x5a   :  { %960 = vmatpush3.bf16.msra.mxu1 %v746_v44  ;;  %961 = vmatprep.mubr.msk.bf16.mxu1 %vm1065_vm0, %v1064_v0 }
  0x61   :  { %950 = vmatmul.mubr.msk.bf16.vlgmr.msra.gmra.mrb[12].mxu0 %vm40_vm2, %v1149_v16 }
  0x65   :  { %962 = vmatmul.mubr.msk.bf16.vlgmr.msra.gmra.mrb[12].mxu1 %vm40_vm2, %v1149_v16 }
  0x99   :  { %v793_v16 = vpop.permute.xlu0 %792 }
  0xf8   :  { %v128_v45 = vpop.f32.mrb[0].mxu0 }
  0xf9   :  { %v879_v46 = vpop.f32.mrb[1].mxu0 }
  0xfa   :  { %v131_v47 = vpop.f32.mrb[2].mxu0 }
  0xfb   :  { %v880_v48 = vpop.f32.mrb[3].mxu0 }
  0xfc   :  { %v224_v49 = vpop.f32.mrb[0].mxu1 }
  0xfd   :  { %v230_v50 = vmax.f32 %v128_v45, %v224_v49  ;;  %v891_v51 = vpop.f32.mrb[1].mxu1 }
  0xfe   :  { %v227_v52 = vpop.f32.mrb[2].mxu1 }
  0xff   :  { %v892_v53 = vpop.f32.mrb[3].mxu1 }
 0x10c   :  { %v313_v54 = vpop.f32.mrb[4].mxu0 }
 0x10d   :  { %v319_v55 = vmax.f32 %v230_v50, %v313_v54  ;;  %v903_v56 = vpop.f32.mrb[5].mxu0 }
 0x10e   :  { %v316_v57 = vpop.f32.mrb[6].mxu0 }
 0x10f   :  { %v904_v58 = vpop.f32.mrb[7].mxu0 }
 0x110   :  { %v410_v59 = vpop.f32.mrb[4].mxu1 }
 0x111   :  { %v416_v60 = vmax.f32 %v319_v55, %v410_v59  ;;  %v915_v61 = vpop.f32.mrb[5].mxu1 }
 0x112   :  { %v413_v62 = vpop.f32.mrb[6].mxu1 }
 0x113   :  { %v916_v63 = vpop.f32.mrb[7].mxu1 }
 0x120   :  { %v499_v0 = vpop.f32.mrb[8].mxu0 }
 0x121   :  { %v505_v1 = vmax.f32 %v416_v60, %v499_v0  ;;  %v927_v2 = vpop.f32.mrb[9].mxu0 }
 0x122   :  { %v502_v3 = vpop.f32.mrb[10].mxu0 }
 0x123   :  { %v928_v4 = vpop.f32.mrb[11].mxu0 }
 0x124   :  { %v596_v5 = vpop.f32.mrb[8].mxu1 }
 0x125   :  { %v602_v6 = vmax.f32 %v505_v1, %v596_v5  ;;  %v939_v7 = vpop.f32.mrb[9].mxu1 }
 0x126   :  { %v599_v8 = vpop.f32.mrb[10].mxu1 }
 0x127   :  { %v940_v9 = vpop.f32.mrb[11].mxu1 }
 0x134   :  { %v685_v10 = vpop.f32.mrb[12].mxu0 }
 0x135   :  { %v691_v11 = vmax.f32 %v602_v6, %v685_v10  ;;  %v951_v12 = vpop.f32.mrb[13].mxu0 }
 0x136   :  { %v688_v13 = vpop.f32.mrb[14].mxu0 }
 0x137   :  { %v952_v14 = vpop.f32.mrb[15].mxu0 }
 0x138   :  { %v782_v15 = vpop.f32.mrb[12].mxu1 }
 0x139   :  { %v788_v17 = vmax.f32 %v691_v11, %v782_v15  ;;  %v963_v18 = vpop.f32.mrb[13].mxu1 }
 0x13a   :  { %v785_v19 = vpop.f32.mrb[14].mxu1 }
 0x13b   :  { %v795_v20 = vadd.f32 %v793_v16, %v788_v17  ;;  %v964_v21 = vpop.f32.mrb[15].mxu1 }
 0x13d   :  { %v796_v22 = vmax.f32 %v795_v20, 0.0 }
 0x13f   :  { %797 = vst [vmem:[#allocation5] sm:$0xff] %v796_v22 }
 0x140   :  { %1046 = shalt.err (!%p1043_p12)
}
 0x141   :  { %s1047_s29 = scalar_lea.hbm %s1260_s5, 128 }
 0x142   :  { %p1048_p13 = scmp.ne.s32.totalorder %s1260_s5, %s1047_s29  ;;  %p1051_p0 = scmp.lt.u32.totalorder %s1047_s29, %s1260_s5 }
 0x144   :  { %p1053_p1 = pnand %p1051_p0, %p1048_p13 }
 0x146   :  { %1056 = shalt.err (!%p1053_p1)
}
 0x147   :  { %807 = dma.vmem_to_hbm [thread:$0]  %s805_s25, 128, %s1260_s5, [#allocation4]  }
 0x148   :  { %1059 = dma.done.wait [#allocation4], 128  }
 0x149   :  { %1060 = vsyncadd [#allocation4], 4294967168 }
 0x14a   :  { %811 = vsyncpa [#allocation3], 1 }
 0x14b   :  { %812 = vsyncpa [#allocation4], 1 }

</bundles_post_ra>
